<compile_context>
chip_gen: v7x
topology: tpu7x:2x2x1
jax: 0.10.0
libtpu: 0.0.40
codegen_flags: <defaults>
</compile_context>

<pallas_src>
import jax
import jax.numpy as jnp
import numpy as np
from jax.experimental import pallas as pl
from jax.experimental.pallas import tpu as pltpu


def lstm_fc_relu_kernel(x_ref, wih_ref, whh_ref, b_ref, wfc_ref, bfc_ref, out_ref, hs_scr):
    """Whole-sequence LSTM + fused FC + ReLU, single invocation (no grid).

    x_ref   : (T, B, D)      input, time-major so per-step slices are contiguous
    wih_ref : (D, 4H)        input->gate weight (PyTorch gate order i, f, g, o)
    whh_ref : (H, 4H)        hidden->gate weight
    b_ref   : (1, 4H)        pre-summed bias (b_ih + b_hh)
    wfc_ref : (H, Opad)      fc weight transposed, zero-padded to 128 lanes
    bfc_ref : (1, Opad)      fc bias, zero-padded
    out_ref : (T*B, Opad)    lane-dense output slab (row index = t*B + b)
    hs_scr  : (T, B, H)      VMEM scratch holding all hidden states
    """
    T, B, D = x_ref.shape
    H = whh_ref.shape[0]

    # Bulk input projection for the whole sequence (one well-shaped MXU pass,
    # bias folded in) -- off the serial recurrence critical path.
    x_flat = x_ref[...].reshape(T * B, D)
    x_proj = (jnp.dot(x_flat, wih_ref[...], preferred_element_type=jnp.float32)
              + b_ref[...])                                    # (T*B, 4H)

    whh = whh_ref[...]                                         # (H, 4H), resident

    h = jnp.zeros((B, H), jnp.float32)
    c = jnp.zeros((B, H), jnp.float32)

    # Fully unrolled time recurrence; h/c live in vregs across steps.
    for t in range(T):
        gates = (x_proj[t * B:(t + 1) * B, :]
                 + jnp.dot(h, whh, preferred_element_type=jnp.float32))  # (B, 4H)

        sig = jax.nn.sigmoid(gates)           # one full-width EUP pass covers i, f, o
        i_g = sig[:, 0 * H:1 * H]
        f_g = sig[:, 1 * H:2 * H]
        o_g = sig[:, 3 * H:4 * H]
        g_g = jnp.tanh(gates[:, 2 * H:3 * H])

        c = f_g * c + i_g * g_g
        h = o_g * jnp.tanh(c)
        hs_scr[t] = h                          # one contiguous (B, H) tile store

    # Single deferred FC + ReLU over all T*B hidden states -> one lane-dense store.
    hs = hs_scr[...].reshape(T * B, H)         # layout-trivial merge of leading dims
    y = jnp.dot(hs, wfc_ref[...], preferred_element_type=jnp.float32) + bfc_ref[...]
    out_ref[...] = jnp.maximum(y, 0.0).astype(out_ref.dtype)


def lstm_forward(x, prep, output_dim):
    """x: (B, T, D) float32 (batch_first). prep: prepared params. Returns (B, T, O)."""
    B, T, D = x.shape
    H = prep["whh"].shape[0]
    o_pad = prep["wfc"].shape[1]

    # Layout plumbing only: time-major input so in-kernel per-step slices are contiguous.
    x_tbd = jnp.swapaxes(x, 0, 1)              # (T, B, D), ~4 KiB

    out_flat = pl.pallas_call(
        lstm_fc_relu_kernel,
        out_shape=jax.ShapeDtypeStruct((T * B, o_pad), jnp.float32),
        # No grid: single invocation; all operands are whole-array blocks resident in VMEM.
        scratch_shapes=[pltpu.VMEM((T, B, H), jnp.float32)],   # hidden states
    )(x_tbd, prep["wih"], prep["whh"], prep["b"], prep["wfc"], prep["bfc"])

    # Rows are ordered t*B + b -> reshape, drop lane padding, trivial (T,B,O)->(B,T,O) swap.
    out = out_flat.reshape(T, B, o_pad)[:, :, :output_dim]
    return jnp.swapaxes(out, 0, 1)


def init_params_torch(key, input_dim, hidden_dim, output_dim):
    """Deterministic init in PyTorch state-dict layout (weight_ih_l0: (4H,D), etc.)."""
    ks = jax.random.split(key, 6)
    k = 1.0 / jnp.sqrt(hidden_dim)
    u = lambda kk, shape: jax.random.uniform(kk, shape, jnp.float32, -k, k)
    return {
        "weight_ih_l0": u(ks[0], (4 * hidden_dim, input_dim)),
        "weight_hh_l0": u(ks[1], (4 * hidden_dim, hidden_dim)),
        "bias_ih_l0":   u(ks[2], (4 * hidden_dim,)),
        "bias_hh_l0":   u(ks[3], (4 * hidden_dim,)),
        "fc_weight":    u(ks[4], (output_dim, hidden_dim)),
        "fc_bias":      u(ks[5], (output_dim,)),
    }


def prepare_params(raw):
    """One-time (init-time) fusion/padding: PyTorch layout -> kernel layout.

    Plain transposes preserve the i, f, g, o gate-block order of PyTorch weights.
    """
    wih = raw["weight_ih_l0"].T                                   # (D, 4H)
    whh = raw["weight_hh_l0"].T                                   # (H, 4H)
    H = whh.shape[0]
    b = (raw["bias_ih_l0"] + raw["bias_hh_l0"]).reshape(1, 4 * H)  # (1, 4H)
    O = raw["fc_weight"].shape[0]
    o_pad = max(128, ((O + 127) // 128) * 128)
    wfc = jnp.zeros((H, o_pad), jnp.float32).at[:, :O].set(raw["fc_weight"].T)
    bfc = jnp.zeros((1, o_pad), jnp.float32).at[:, :O].set(raw["fc_bias"].reshape(1, O))
    return {"wih": wih, "whh": whh, "b": b, "wfc": wfc, "bfc": bfc}


def lstm_reference(x, raw):
    """Pure-JAX reference of the PyTorch module forward (f32), for a sanity check."""
    wih, whh = raw["weight_ih_l0"], raw["weight_hh_l0"]
    bih, bhh = raw["bias_ih_l0"], raw["bias_hh_l0"]
    wfc, bfc = raw["fc_weight"], raw["fc_bias"]
    B, T, D = x.shape
    H = whh.shape[1]
    hp = jax.lax.Precision.HIGHEST
    h = jnp.zeros((B, H), jnp.float32)
    c = jnp.zeros((B, H), jnp.float32)
    outs = []
    for t in range(T):
        g = (jnp.dot(x[:, t, :], wih.T, precision=hp)
             + jnp.dot(h, whh.T, precision=hp) + bih + bhh)
        i = jax.nn.sigmoid(g[:, 0 * H:1 * H])
        f = jax.nn.sigmoid(g[:, 1 * H:2 * H])
        gg = jnp.tanh(g[:, 2 * H:3 * H])
        o = jax.nn.sigmoid(g[:, 3 * H:4 * H])
        c = f * c + i * gg
        h = o * jnp.tanh(c)
        outs.append(h)
    hs = jnp.stack(outs, axis=1)                                  # (B, T, H)
    y = jnp.dot(hs, wfc.T, precision=hp) + bfc
    return jnp.maximum(y, 0.0)


if __name__ == "__main__":
    B, T = 8, 8
    input_dim, hidden_dim, output_dim = 16, 32, 8

    key = jax.random.PRNGKey(0)
    k_x, k_p = jax.random.split(key)
    x = jax.random.normal(k_x, (B, T, input_dim), dtype=jnp.float32)

    raw = init_params_torch(k_p, input_dim, hidden_dim, output_dim)
    prep = prepare_params(raw)      # one-time fusion/padding (not in the per-call path)

    out = lstm_forward(x, prep, output_dim)
    out = jax.block_until_ready(out)
    assert out.shape == (B, T, output_dim)

    ref = jax.block_until_ready(lstm_reference(x, raw))
    assert np.allclose(np.asarray(out), np.asarray(ref), atol=2e-2, rtol=2e-2)

    print("KERNEL_OK")
</pallas_src>

<mosaic_0001>
module attributes {stable_mosaic.version = 11 : i64} {
  func.func @lstm_fc_relu_kernel(%arg0: memref<8x8x16xf32, #tpu.memory_space<vmem>>, %arg1: memref<16x128xf32, #tpu.memory_space<vmem>>, %arg2: memref<32x128xf32, #tpu.memory_space<vmem>>, %arg3: memref<1x128xf32, #tpu.memory_space<vmem>>, %arg4: memref<32x128xf32, #tpu.memory_space<vmem>>, %arg5: memref<1x128xf32, #tpu.memory_space<vmem>>, %arg6: memref<64x128xf32, #tpu.memory_space<vmem>>, %arg7: memref<8x8x32xf32, #tpu.memory_space<vmem>>) attributes {dimension_semantics = [], scalar_prefetch = 0 : i64, scratch_operands = 1 : i64, tpu.core_type = #tpu.core_type<tc>} {
    %c0 = arith.constant 0 : index
    %c0_0 = arith.constant 0 : index
    %c0_1 = arith.constant 0 : index
    %0 = vector.load %arg0[%c0, %c0_0, %c0_1] : memref<8x8x16xf32, #tpu.memory_space<vmem>>, vector<8x8x16xf32>
    %1 = vector.shape_cast %0 : vector<8x8x16xf32> to vector<64x16xf32>
    %c0_2 = arith.constant 0 : index
    %c0_3 = arith.constant 0 : index
    %2 = vector.load %arg1[%c0_2, %c0_3] : memref<16x128xf32, #tpu.memory_space<vmem>>, vector<16x128xf32>
    %cst = arith.constant dense<0.000000e+00> : vector<64x128xf32>
    %3 = tpu.matmul %1, %2, %cst {dimension_numbers = #tpu.dot_dimension_numbers<[1], [0], [0], [1], [0, 0, 1, 1], [], []>} : vector<64x16xf32>, vector<16x128xf32>, vector<64x128xf32> -> vector<64x128xf32>
    %c0_4 = arith.constant 0 : index
    %c0_5 = arith.constant 0 : index
    %4 = vector.load %arg3[%c0_4, %c0_5] : memref<1x128xf32, #tpu.memory_space<vmem>>, vector<1x128xf32>
    %5 = vector.broadcast %4 : vector<1x128xf32> to vector<64x128xf32>
    %6 = arith.addf %3, %5 : vector<64x128xf32>
    %c0_6 = arith.constant 0 : index
    %c0_7 = arith.constant 0 : index
    %7 = vector.load %arg2[%c0_6, %c0_7] : memref<32x128xf32, #tpu.memory_space<vmem>>, vector<32x128xf32>
    %cst_8 = arith.constant 0.000000e+00 : f32
    %8 = vector.broadcast %cst_8 : f32 to vector<8x32xf32>
    %cst_9 = arith.constant 0.000000e+00 : f32
    %9 = vector.broadcast %cst_9 : f32 to vector<8x32xf32>
    %10 = vector.extract_strided_slice %6 {offsets = [0, 0], sizes = [8, 128], strides = [1, 1]} : vector<64x128xf32> to vector<8x128xf32>
    %cst_10 = arith.constant dense<0.000000e+00> : vector<8x128xf32>
    %11 = tpu.matmul %8, %7, %cst_10 {dimension_numbers = #tpu.dot_dimension_numbers<[1], [0], [0], [1], [0, 0, 1, 1], [], []>} : vector<8x32xf32>, vector<32x128xf32>, vector<8x128xf32> -> vector<8x128xf32>
    %12 = arith.addf %10, %11 : vector<8x128xf32>
    %13 = arith.negf %12 : vector<8x128xf32>
    %14 = math.exp %13 : vector<8x128xf32>
    %cst_11 = arith.constant 1.000000e+00 : f32
    %15 = vector.broadcast %cst_11 : f32 to vector<8x128xf32>
    %16 = arith.addf %15, %14 : vector<8x128xf32>
    %17 = arith.divf %15, %16 : vector<8x128xf32>
    %18 = vector.extract_strided_slice %17 {offsets = [0, 0], sizes = [8, 32], strides = [1, 1]} : vector<8x128xf32> to vector<8x32xf32>
    %19 = vector.extract_strided_slice %17 {offsets = [0, 32], sizes = [8, 32], strides = [1, 1]} : vector<8x128xf32> to vector<8x32xf32>
    %20 = vector.extract_strided_slice %17 {offsets = [0, 96], sizes = [8, 32], strides = [1, 1]} : vector<8x128xf32> to vector<8x32xf32>
    %21 = vector.extract_strided_slice %12 {offsets = [0, 64], sizes = [8, 32], strides = [1, 1]} : vector<8x128xf32> to vector<8x32xf32>
    %22 = math.tanh %21 : vector<8x32xf32>
    %23 = arith.mulf %19, %9 : vector<8x32xf32>
    %24 = arith.mulf %18, %22 : vector<8x32xf32>
    %25 = arith.addf %23, %24 : vector<8x32xf32>
    %26 = math.tanh %25 : vector<8x32xf32>
    %27 = arith.mulf %20, %26 : vector<8x32xf32>
    %c0_12 = arith.constant 0 : index
    %c0_13 = arith.constant 0 : index
    %c0_14 = arith.constant 0 : index
    %28 = vector.load %arg7[%c0_12, %c0_13, %c0_14] : memref<8x8x32xf32, #tpu.memory_space<vmem>>, vector<1x8x32xf32>
    %29 = vector.shape_cast %28 : vector<1x8x32xf32> to vector<8x32xf32>
    %30 = vector.shape_cast %27 : vector<8x32xf32> to vector<1x8x32xf32>
    tpu.vector_store %arg7[%c0_12, %c0_13, %c0_14], %30 {strides = array<i32>} : memref<8x8x32xf32, #tpu.memory_space<vmem>>, vector<1x8x32xf32>,
    %31 = vector.extract_strided_slice %6 {offsets = [8, 0], sizes = [8, 128], strides = [1, 1]} : vector<64x128xf32> to vector<8x128xf32>
    %cst_15 = arith.constant dense<0.000000e+00> : vector<8x128xf32>
    %32 = tpu.matmul %27, %7, %cst_15 {dimension_numbers = #tpu.dot_dimension_numbers<[1], [0], [0], [1], [0, 0, 1, 1], [], []>} : vector<8x32xf32>, vector<32x128xf32>, vector<8x128xf32> -> vector<8x128xf32>
    %33 = arith.addf %31, %32 : vector<8x128xf32>
    %34 = arith.negf %33 : vector<8x128xf32>
    %35 = math.exp %34 : vector<8x128xf32>
    %cst_16 = arith.constant 1.000000e+00 : f32
    %36 = vector.broadcast %cst_16 : f32 to vector<8x128xf32>
    %37 = arith.addf %36, %35 : vector<8x128xf32>
    %38 = arith.divf %36, %37 : vector<8x128xf32>
    %39 = vector.extract_strided_slice %38 {offsets = [0, 0], sizes = [8, 32], strides = [1, 1]} : vector<8x128xf32> to vector<8x32xf32>
    %40 = vector.extract_strided_slice %38 {offsets = [0, 32], sizes = [8, 32], strides = [1, 1]} : vector<8x128xf32> to vector<8x32xf32>
    %41 = vector.extract_strided_slice %38 {offsets = [0, 96], sizes = [8, 32], strides = [1, 1]} : vector<8x128xf32> to vector<8x32xf32>
    %42 = vector.extract_strided_slice %33 {offsets = [0, 64], sizes = [8, 32], strides = [1, 1]} : vector<8x128xf32> to vector<8x32xf32>
    %43 = math.tanh %42 : vector<8x32xf32>
    %44 = arith.mulf %40, %25 : vector<8x32xf32>
    %45 = arith.mulf %39, %43 : vector<8x32xf32>
    %46 = arith.addf %44, %45 : vector<8x32xf32>
    %47 = math.tanh %46 : vector<8x32xf32>
    %48 = arith.mulf %41, %47 : vector<8x32xf32>
    %c1 = arith.constant 1 : index
    %c0_17 = arith.constant 0 : index
    %c0_18 = arith.constant 0 : index
    %49 = vector.load %arg7[%c1, %c0_17, %c0_18] : memref<8x8x32xf32, #tpu.memory_space<vmem>>, vector<1x8x32xf32>
    %50 = vector.shape_cast %49 : vector<1x8x32xf32> to vector<8x32xf32>
    %51 = vector.shape_cast %48 : vector<8x32xf32> to vector<1x8x32xf32>
    tpu.vector_store %arg7[%c1, %c0_17, %c0_18], %51 {strides = array<i32>} : memref<8x8x32xf32, #tpu.memory_space<vmem>>, vector<1x8x32xf32>,
    %52 = vector.extract_strided_slice %6 {offsets = [16, 0], sizes = [8, 128], strides = [1, 1]} : vector<64x128xf32> to vector<8x128xf32>
    %cst_19 = arith.constant dense<0.000000e+00> : vector<8x128xf32>
    %53 = tpu.matmul %48, %7, %cst_19 {dimension_numbers = #tpu.dot_dimension_numbers<[1], [0], [0], [1], [0, 0, 1, 1], [], []>} : vector<8x32xf32>, vector<32x128xf32>, vector<8x128xf32> -> vector<8x128xf32>
    %54 = arith.addf %52, %53 : vector<8x128xf32>
    %55 = arith.negf %54 : vector<8x128xf32>
    %56 = math.exp %55 : vector<8x128xf32>
    %cst_20 = arith.constant 1.000000e+00 : f32
    %57 = vector.broadcast %cst_20 : f32 to vector<8x128xf32>
    %58 = arith.addf %57, %56 : vector<8x128xf32>
    %59 = arith.divf %57, %58 : vector<8x128xf32>
    %60 = vector.extract_strided_slice %59 {offsets = [0, 0], sizes = [8, 32], strides = [1, 1]} : vector<8x128xf32> to vector<8x32xf32>
    %61 = vector.extract_strided_slice %59 {offsets = [0, 32], sizes = [8, 32], strides = [1, 1]} : vector<8x128xf32> to vector<8x32xf32>
    %62 = vector.extract_strided_slice %59 {offsets = [0, 96], sizes = [8, 32], strides = [1, 1]} : vector<8x128xf32> to vector<8x32xf32>
    %63 = vector.extract_strided_slice %54 {offsets = [0, 64], sizes = [8, 32], strides = [1, 1]} : vector<8x128xf32> to vector<8x32xf32>
    %64 = math.tanh %63 : vector<8x32xf32>
    %65 = arith.mulf %61, %46 : vector<8x32xf32>
    %66 = arith.mulf %60, %64 : vector<8x32xf32>
    %67 = arith.addf %65, %66 : vector<8x32xf32>
    %68 = math.tanh %67 : vector<8x32xf32>
    %69 = arith.mulf %62, %68 : vector<8x32xf32>
    %c2 = arith.constant 2 : index
    %c0_21 = arith.constant 0 : index
    %c0_22 = arith.constant 0 : index
    %70 = vector.load %arg7[%c2, %c0_21, %c0_22] : memref<8x8x32xf32, #tpu.memory_space<vmem>>, vector<1x8x32xf32>
    %71 = vector.shape_cast %70 : vector<1x8x32xf32> to vector<8x32xf32>
    %72 = vector.shape_cast %69 : vector<8x32xf32> to vector<1x8x32xf32>
    tpu.vector_store %arg7[%c2, %c0_21, %c0_22], %72 {strides = array<i32>} : memref<8x8x32xf32, #tpu.memory_space<vmem>>, vector<1x8x32xf32>,
    %73 = vector.extract_strided_slice %6 {offsets = [24, 0], sizes = [8, 128], strides = [1, 1]} : vector<64x128xf32> to vector<8x128xf32>
    %cst_23 = arith.constant dense<0.000000e+00> : vector<8x128xf32>
    %74 = tpu.matmul %69, %7, %cst_23 {dimension_numbers = #tpu.dot_dimension_numbers<[1], [0], [0], [1], [0, 0, 1, 1], [], []>} : vector<8x32xf32>, vector<32x128xf32>, vector<8x128xf32> -> vector<8x128xf32>
    %75 = arith.addf %73, %74 : vector<8x128xf32>
    %76 = arith.negf %75 : vector<8x128xf32>
    %77 = math.exp %76 : vector<8x128xf32>
    %cst_24 = arith.constant 1.000000e+00 : f32
    %78 = vector.broadcast %cst_24 : f32 to vector<8x128xf32>
    %79 = arith.addf %78, %77 : vector<8x128xf32>
    %80 = arith.divf %78, %79 : vector<8x128xf32>
    %81 = vector.extract_strided_slice %80 {offsets = [0, 0], sizes = [8, 32], strides = [1, 1]} : vector<8x128xf32> to vector<8x32xf32>
    %82 = vector.extract_strided_slice %80 {offsets = [0, 32], sizes = [8, 32], strides = [1, 1]} : vector<8x128xf32> to vector<8x32xf32>
    %83 = vector.extract_strided_slice %80 {offsets = [0, 96], sizes = [8, 32], strides = [1, 1]} : vector<8x128xf32> to vector<8x32xf32>
    %84 = vector.extract_strided_slice %75 {offsets = [0, 64], sizes = [8, 32], strides = [1, 1]} : vector<8x128xf32> to vector<8x32xf32>
    %85 = math.tanh %84 : vector<8x32xf32>
    %86 = arith.mulf %82, %67 : vector<8x32xf32>
    %87 = arith.mulf %81, %85 : vector<8x32xf32>
    %88 = arith.addf %86, %87 : vector<8x32xf32>
    %89 = math.tanh %88 : vector<8x32xf32>
    %90 = arith.mulf %83, %89 : vector<8x32xf32>
    %c3 = arith.constant 3 : index
    %c0_25 = arith.constant 0 : index
    %c0_26 = arith.constant 0 : index
    %91 = vector.load %arg7[%c3, %c0_25, %c0_26] : memref<8x8x32xf32, #tpu.memory_space<vmem>>, vector<1x8x32xf32>
    %92 = vector.shape_cast %91 : vector<1x8x32xf32> to vector<8x32xf32>
    %93 = vector.shape_cast %90 : vector<8x32xf32> to vector<1x8x32xf32>
    tpu.vector_store %arg7[%c3, %c0_25, %c0_26], %93 {strides = array<i32>} : memref<8x8x32xf32, #tpu.memory_space<vmem>>, vector<1x8x32xf32>,
    %94 = vector.extract_strided_slice %6 {offsets = [32, 0], sizes = [8, 128], strides = [1, 1]} : vector<64x128xf32> to vector<8x128xf32>
    %cst_27 = arith.constant dense<0.000000e+00> : vector<8x128xf32>
    %95 = tpu.matmul %90, %7, %cst_27 {dimension_numbers = #tpu.dot_dimension_numbers<[1], [0], [0], [1], [0, 0, 1, 1], [], []>} : vector<8x32xf32>, vector<32x128xf32>, vector<8x128xf32> -> vector<8x128xf32>
    %96 = arith.addf %94, %95 : vector<8x128xf32>
    %97 = arith.negf %96 : vector<8x128xf32>
    %98 = math.exp %97 : vector<8x128xf32>
    %cst_28 = arith.constant 1.000000e+00 : f32
    %99 = vector.broadcast %cst_28 : f32 to vector<8x128xf32>
    %100 = arith.addf %99, %98 : vector<8x128xf32>
    %101 = arith.divf %99, %100 : vector<8x128xf32>
    %102 = vector.extract_strided_slice %101 {offsets = [0, 0], sizes = [8, 32], strides = [1, 1]} : vector<8x128xf32> to vector<8x32xf32>
    %103 = vector.extract_strided_slice %101 {offsets = [0, 32], sizes = [8, 32], strides = [1, 1]} : vector<8x128xf32> to vector<8x32xf32>
    %104 = vector.extract_strided_slice %101 {offsets = [0, 96], sizes = [8, 32], strides = [1, 1]} : vector<8x128xf32> to vector<8x32xf32>
    %105 = vector.extract_strided_slice %96 {offsets = [0, 64], sizes = [8, 32], strides = [1, 1]} : vector<8x128xf32> to vector<8x32xf32>
    %106 = math.tanh %105 : vector<8x32xf32>
    %107 = arith.mulf %103, %88 : vector<8x32xf32>
    %108 = arith.mulf %102, %106 : vector<8x32xf32>
    %109 = arith.addf %107, %108 : vector<8x32xf32>
    %110 = math.tanh %109 : vector<8x32xf32>
    %111 = arith.mulf %104, %110 : vector<8x32xf32>
    %c4 = arith.constant 4 : index
    %c0_29 = arith.constant 0 : index
    %c0_30 = arith.constant 0 : index
    %112 = vector.load %arg7[%c4, %c0_29, %c0_30] : memref<8x8x32xf32, #tpu.memory_space<vmem>>, vector<1x8x32xf32>
    %113 = vector.shape_cast %112 : vector<1x8x32xf32> to vector<8x32xf32>
    %114 = vector.shape_cast %111 : vector<8x32xf32> to vector<1x8x32xf32>
    tpu.vector_store %arg7[%c4, %c0_29, %c0_30], %114 {strides = array<i32>} : memref<8x8x32xf32, #tpu.memory_space<vmem>>, vector<1x8x32xf32>,
    %115 = vector.extract_strided_slice %6 {offsets = [40, 0], sizes = [8, 128], strides = [1, 1]} : vector<64x128xf32> to vector<8x128xf32>
    %cst_31 = arith.constant dense<0.000000e+00> : vector<8x128xf32>
    %116 = tpu.matmul %111, %7, %cst_31 {dimension_numbers = #tpu.dot_dimension_numbers<[1], [0], [0], [1], [0, 0, 1, 1], [], []>} : vector<8x32xf32>, vector<32x128xf32>, vector<8x128xf32> -> vector<8x128xf32>
    %117 = arith.addf %115, %116 : vector<8x128xf32>
    %118 = arith.negf %117 : vector<8x128xf32>
    %119 = math.exp %118 : vector<8x128xf32>
    %cst_32 = arith.constant 1.000000e+00 : f32
    %120 = vector.broadcast %cst_32 : f32 to vector<8x128xf32>
    %121 = arith.addf %120, %119 : vector<8x128xf32>
    %122 = arith.divf %120, %121 : vector<8x128xf32>
    %123 = vector.extract_strided_slice %122 {offsets = [0, 0], sizes = [8, 32], strides = [1, 1]} : vector<8x128xf32> to vector<8x32xf32>
    %124 = vector.extract_strided_slice %122 {offsets = [0, 32], sizes = [8, 32], strides = [1, 1]} : vector<8x128xf32> to vector<8x32xf32>
    %125 = vector.extract_strided_slice %122 {offsets = [0, 96], sizes = [8, 32], strides = [1, 1]} : vector<8x128xf32> to vector<8x32xf32>
    %126 = vector.extract_strided_slice %117 {offsets = [0, 64], sizes = [8, 32], strides = [1, 1]} : vector<8x128xf32> to vector<8x32xf32>
    %127 = math.tanh %126 : vector<8x32xf32>
    %128 = arith.mulf %124, %109 : vector<8x32xf32>
    %129 = arith.mulf %123, %127 : vector<8x32xf32>
    %130 = arith.addf %128, %129 : vector<8x32xf32>
    %131 = math.tanh %130 : vector<8x32xf32>
    %132 = arith.mulf %125, %131 : vector<8x32xf32>
    %c5 = arith.constant 5 : index
    %c0_33 = arith.constant 0 : index
    %c0_34 = arith.constant 0 : index
    %133 = vector.load %arg7[%c5, %c0_33, %c0_34] : memref<8x8x32xf32, #tpu.memory_space<vmem>>, vector<1x8x32xf32>
    %134 = vector.shape_cast %133 : vector<1x8x32xf32> to vector<8x32xf32>
    %135 = vector.shape_cast %132 : vector<8x32xf32> to vector<1x8x32xf32>
    tpu.vector_store %arg7[%c5, %c0_33, %c0_34], %135 {strides = array<i32>} : memref<8x8x32xf32, #tpu.memory_space<vmem>>, vector<1x8x32xf32>,
    %136 = vector.extract_strided_slice %6 {offsets = [48, 0], sizes = [8, 128], strides = [1, 1]} : vector<64x128xf32> to vector<8x128xf32>
    %cst_35 = arith.constant dense<0.000000e+00> : vector<8x128xf32>
    %137 = tpu.matmul %132, %7, %cst_35 {dimension_numbers = #tpu.dot_dimension_numbers<[1], [0], [0], [1], [0, 0, 1, 1], [], []>} : vector<8x32xf32>, vector<32x128xf32>, vector<8x128xf32> -> vector<8x128xf32>
    %138 = arith.addf %136, %137 : vector<8x128xf32>
    %139 = arith.negf %138 : vector<8x128xf32>
    %140 = math.exp %139 : vector<8x128xf32>
    %cst_36 = arith.constant 1.000000e+00 : f32
    %141 = vector.broadcast %cst_36 : f32 to vector<8x128xf32>
    %142 = arith.addf %141, %140 : vector<8x128xf32>
    %143 = arith.divf %141, %142 : vector<8x128xf32>
    %144 = vector.extract_strided_slice %143 {offsets = [0, 0], sizes = [8, 32], strides = [1, 1]} : vector<8x128xf32> to vector<8x32xf32>
    %145 = vector.extract_strided_slice %143 {offsets = [0, 32], sizes = [8, 32], strides = [1, 1]} : vector<8x128xf32> to vector<8x32xf32>
    %146 = vector.extract_strided_slice %143 {offsets = [0, 96], sizes = [8, 32], strides = [1, 1]} : vector<8x128xf32> to vector<8x32xf32>
    %147 = vector.extract_strided_slice %138 {offsets = [0, 64], sizes = [8, 32], strides = [1, 1]} : vector<8x128xf32> to vector<8x32xf32>
    %148 = math.tanh %147 : vector<8x32xf32>
    %149 = arith.mulf %145, %130 : vector<8x32xf32>
    %150 = arith.mulf %144, %148 : vector<8x32xf32>
    %151 = arith.addf %149, %150 : vector<8x32xf32>
    %152 = math.tanh %151 : vector<8x32xf32>
    %153 = arith.mulf %146, %152 : vector<8x32xf32>
    %c6 = arith.constant 6 : index
    %c0_37 = arith.constant 0 : index
    %c0_38 = arith.constant 0 : index
    %154 = vector.load %arg7[%c6, %c0_37, %c0_38] : memref<8x8x32xf32, #tpu.memory_space<vmem>>, vector<1x8x32xf32>
    %155 = vector.shape_cast %154 : vector<1x8x32xf32> to vector<8x32xf32>
    %156 = vector.shape_cast %153 : vector<8x32xf32> to vector<1x8x32xf32>
    tpu.vector_store %arg7[%c6, %c0_37, %c0_38], %156 {strides = array<i32>} : memref<8x8x32xf32, #tpu.memory_space<vmem>>, vector<1x8x32xf32>,
    %157 = vector.extract_strided_slice %6 {offsets = [56, 0], sizes = [8, 128], strides = [1, 1]} : vector<64x128xf32> to vector<8x128xf32>
    %cst_39 = arith.constant dense<0.000000e+00> : vector<8x128xf32>
    %158 = tpu.matmul %153, %7, %cst_39 {dimension_numbers = #tpu.dot_dimension_numbers<[1], [0], [0], [1], [0, 0, 1, 1], [], []>} : vector<8x32xf32>, vector<32x128xf32>, vector<8x128xf32> -> vector<8x128xf32>
    %159 = arith.addf %157, %158 : vector<8x128xf32>
    %160 = arith.negf %159 : vector<8x128xf32>
    %161 = math.exp %160 : vector<8x128xf32>
    %cst_40 = arith.constant 1.000000e+00 : f32
    %162 = vector.broadcast %cst_40 : f32 to vector<8x128xf32>
    %163 = arith.addf %162, %161 : vector<8x128xf32>
    %164 = arith.divf %162, %163 : vector<8x128xf32>
    %165 = vector.extract_strided_slice %164 {offsets = [0, 0], sizes = [8, 32], strides = [1, 1]} : vector<8x128xf32> to vector<8x32xf32>
    %166 = vector.extract_strided_slice %164 {offsets = [0, 32], sizes = [8, 32], strides = [1, 1]} : vector<8x128xf32> to vector<8x32xf32>
    %167 = vector.extract_strided_slice %164 {offsets = [0, 96], sizes = [8, 32], strides = [1, 1]} : vector<8x128xf32> to vector<8x32xf32>
    %168 = vector.extract_strided_slice %159 {offsets = [0, 64], sizes = [8, 32], strides = [1, 1]} : vector<8x128xf32> to vector<8x32xf32>
    %169 = math.tanh %168 : vector<8x32xf32>
    %170 = arith.mulf %166, %151 : vector<8x32xf32>
    %171 = arith.mulf %165, %169 : vector<8x32xf32>
    %172 = arith.addf %170, %171 : vector<8x32xf32>
    %173 = math.tanh %172 : vector<8x32xf32>
    %174 = arith.mulf %167, %173 : vector<8x32xf32>
    %c7 = arith.constant 7 : index
    %c0_41 = arith.constant 0 : index
    %c0_42 = arith.constant 0 : index
    %175 = vector.load %arg7[%c7, %c0_41, %c0_42] : memref<8x8x32xf32, #tpu.memory_space<vmem>>, vector<1x8x32xf32>
    %176 = vector.shape_cast %175 : vector<1x8x32xf32> to vector<8x32xf32>
    %177 = vector.shape_cast %174 : vector<8x32xf32> to vector<1x8x32xf32>
    tpu.vector_store %arg7[%c7, %c0_41, %c0_42], %177 {strides = array<i32>} : memref<8x8x32xf32, #tpu.memory_space<vmem>>, vector<1x8x32xf32>,
    %c0_43 = arith.constant 0 : index
    %c0_44 = arith.constant 0 : index
    %c0_45 = arith.constant 0 : index
    %178 = vector.load %arg7[%c0_43, %c0_44, %c0_45] : memref<8x8x32xf32, #tpu.memory_space<vmem>>, vector<8x8x32xf32>
    %179 = vector.shape_cast %178 : vector<8x8x32xf32> to vector<64x32xf32>
    %c0_46 = arith.constant 0 : index
    %c0_47 = arith.constant 0 : index
    %180 = vector.load %arg4[%c0_46, %c0_47] : memref<32x128xf32, #tpu.memory_space<vmem>>, vector<32x128xf32>
    %cst_48 = arith.constant dense<0.000000e+00> : vector<64x128xf32>
    %181 = tpu.matmul %179, %180, %cst_48 {dimension_numbers = #tpu.dot_dimension_numbers<[1], [0], [0], [1], [0, 0, 1, 1], [], []>} : vector<64x32xf32>, vector<32x128xf32>, vector<64x128xf32> -> vector<64x128xf32>
    %c0_49 = arith.constant 0 : index
    %c0_50 = arith.constant 0 : index
    %182 = vector.load %arg5[%c0_49, %c0_50] : memref<1x128xf32, #tpu.memory_space<vmem>>, vector<1x128xf32>
    %183 = vector.broadcast %182 : vector<1x128xf32> to vector<64x128xf32>
    %184 = arith.addf %181, %183 : vector<64x128xf32>
    %cst_51 = arith.constant 0.000000e+00 : f32
    %185 = vector.broadcast %cst_51 : f32 to vector<64x128xf32>
    %186 = arith.maximumf %184, %185 : vector<64x128xf32>
    %c0_52 = arith.constant 0 : index
    %c0_53 = arith.constant 0 : index
    %187 = vector.load %arg6[%c0_52, %c0_53] : memref<64x128xf32, #tpu.memory_space<vmem>>, vector<64x128xf32>
    tpu.vector_store %arg6[%c0_52, %c0_53], %186 {strides = array<i32>} : memref<64x128xf32, #tpu.memory_space<vmem>>, vector<64x128xf32>,
    return
  }
}

</mosaic_0001>

<bundles_post_ra>
// kernel: tpu_custom_call.1
= control target key start
LH: loop header
LB: loop body
LE: loop exit
PB: predicated region body
PF: predicated region fallthrough
CT: control target
= control target key end

     0   :  { %11 = vsyncpa [#allocation4], 0  ;;  %s2007_s0 = inlined_call_operand.hbm [shape: f32[8,8,16], index: 0, kind: input, shape index: {}]   ;;  %s2008_s1 = inlined_call_operand.hbm [shape: f32[16,128], index: 1, kind: input, shape index: {}]   ;;  %s2009_s2 = inlined_call_operand.hbm [shape: f32[32,128], index: 2, kind: input, shape index: {}]   ;;  %s2010_s3 = inlined_call_operand.vmem [shape: f32[1,128], index: 3, kind: input, shape index: {}]   ;;  %s2011_s4 = inlined_call_operand.hbm [shape: f32[32,128], index: 4, kind: input, shape index: {}]   ;;  %s2012_s5 = inlined_call_operand.vmem [shape: f32[1,128], index: 5, kind: input, shape index: {}]   ;;  %s2013_s6 = inlined_call_operand.hbm [shape: f32[64,128], index: 6, kind: output, shape index: {}]  }
   0x1   :  { %12 = vsyncpa [#allocation7], 0 }
   0x2   :  { %13 = vsyncpa [#allocation10], 0 }
   0x3   :  { %14 = vsyncpa [#allocation5], 0  ;;  %s1713_s21 = smov [#allocation6]   ;;  %s1714_s23 = smov [#allocation3]  }
   0x4   :  { %s32_s22 = sshll.u32 %s1713_s21, 4  ;;  %s20_s24 = sshll.u32 %s1714_s23, 4  ;;  %s33_s22 = int_to_ptr.vmem [resolvable:$true] %s32_s22  ;;  %s1760_s24 = int_to_ptr.vmem [resolvable:$true] %s20_s24 }
   0x5   :  { %s1595_s27 = scalar_lea.hbm %s2008_s1, 256 }
   0x6   :  { %p1596_p0 = scmp.ne.s32.totalorder %s2008_s1, %s1595_s27  ;;  %p1599_p1 = scmp.lt.u32.totalorder %s1595_s27, %s2008_s1 }
   0x8   :  { %p1601_p2 = pnand %p1599_p1, %p1596_p0 }
   0xa   :  { %1604 = shalt.err (!%p1601_p2)
}
   0xb   :  { %s1605_s8 = scalar_lea.vmem %s33_s22, 256  ;;  %p1610_p4 = scmp.lt.s32.totalorder %s33_s22, %s33_s22 }
   0xc   :  { %p1606_p3 = scmp.ne.s32.totalorder %s33_s22, %s1605_s8  ;;  %p1611_p5 = scmp.lt.s32.totalorder %s1605_s8, %s1605_s8 }
   0xe   :  { %p1612_p6 = por %p1611_p5, %p1610_p4 }
  0x10   :  { %p1613_p7 = pnand %p1612_p6, %p1606_p3 }
  0x12   :  { %1616 = shalt.err (!%p1613_p7)
}
  0x13   :  { %s1715_s9 = smov 128   ;;  %s1716_s10 = smov 8  }
  0x14   :  { %38 = dma.hbm_to_vmem [thread:$0]  %s2008_s1, 256, %s33_s22, [#allocation7], %s1715_s9, %s1715_s9, %s1716_s10  }
  0x15   :  { %s1617_s15 = scalar_lea.hbm %s2007_s0, 1024 }
  0x16   :  { %p1618_p8 = scmp.ne.s32.totalorder %s2007_s0, %s1617_s15  ;;  %p1621_p9 = scmp.lt.u32.totalorder %s1617_s15, %s2007_s0 }
  0x18   :  { %p1623_p10 = pnand %p1621_p9, %p1618_p8 }
  0x1a   :  { %1626 = shalt.err (!%p1623_p10)
}
  0x1b   :  { %s1627_s20 = scalar_lea.vmem %s1760_s24, 1024  ;;  %p1632_p12 = scmp.lt.s32.totalorder %s1760_s24, %s1760_s24 }
  0x1c   :  { %p1628_p11 = scmp.ne.s32.totalorder %s1760_s24, %s1627_s20  ;;  %p1633_p13 = scmp.lt.s32.totalorder %s1627_s20, %s1627_s20 }
  0x1e   :  { %p1634_p0 = por %p1633_p13, %p1632_p12 }
  0x20   :  { %p1635_p1 = pnand %p1634_p0, %p1628_p11 }
  0x22   :  { %1638 = shalt.err (!%p1635_p1)
}
  0x23   :  { %26 = dma.hbm_to_vmem [thread:$0]  %s2007_s0, 1024, %s1760_s24, [#allocation4], %s1715_s9, %s1715_s9, %s1716_s10  }
  0x24   :  { %s1717_s22 = smov [#allocation8]   ;;  %s1718_s25 = smov [#allocation9]  }
  0x25   :  { %s44_s23 = sshll.u32 %s1717_s22, 4  ;;  %s58_s26 = sshll.u32 %s1718_s25, 4  ;;  %s45_s23 = int_to_ptr.vmem [resolvable:$true] %s44_s23  ;;  %s1797_s26 = int_to_ptr.vmem [resolvable:$true] %s58_s26 }
  0x26   :  { %s1639_s29 = scalar_lea.hbm %s2009_s2, 512 }
  0x27   :  { %p1640_p2 = scmp.ne.s32.totalorder %s2009_s2, %s1639_s29  ;;  %p1643_p3 = scmp.lt.u32.totalorder %s1639_s29, %s2009_s2 }
  0x29   :  { %p1645_p4 = pnand %p1643_p3, %p1640_p2 }
  0x2b   :  { %1648 = shalt.err (!%p1645_p4)
}
  0x2c   :  { %s1649_s0 = scalar_lea.vmem %s45_s23, 512  ;;  %p1654_p6 = scmp.lt.s32.totalorder %s45_s23, %s45_s23 }
  0x2d   :  { %p1650_p5 = scmp.ne.s32.totalorder %s45_s23, %s1649_s0  ;;  %p1655_p7 = scmp.lt.s32.totalorder %s1649_s0, %s1649_s0 }
  0x2f   :  { %p1656_p8 = por %p1655_p7, %p1654_p6 }
  0x31   :  { %p1657_p9 = pnand %p1656_p8, %p1650_p5 }
  0x33   :  { %1660 = shalt.err (!%p1657_p9)
}
  0x34   :  { %50 = dma.hbm_to_vmem [thread:$0]  %s2009_s2, 512, %s45_s23, [#allocation7], %s1715_s9, %s1715_s9, %s1716_s10  }
  0x35   :  { %s1661_s15 = scalar_lea.hbm %s2011_s4, 512 }
  0x36   :  { %p1662_p10 = scmp.ne.s32.totalorder %s2011_s4, %s1661_s15  ;;  %p1665_p11 = scmp.lt.u32.totalorder %s1661_s15, %s2011_s4 }
  0x38   :  { %p1667_p12 = pnand %p1665_p11, %p1662_p10 }
  0x3a   :  { %1670 = shalt.err (!%p1667_p12)
}
  0x3b   :  { %s1671_s20 = scalar_lea.vmem %s1797_s26, 512  ;;  %p1676_p0 = scmp.lt.s32.totalorder %s1797_s26, %s1797_s26 }
  0x3c   :  { %p1672_p13 = scmp.ne.s32.totalorder %s1797_s26, %s1671_s20  ;;  %p1677_p1 = scmp.lt.s32.totalorder %s1671_s20, %s1671_s20 }
  0x3e   :  { %p1678_p2 = por %p1677_p1, %p1676_p0 }
  0x40   :  { %p1679_p3 = pnand %p1678_p2, %p1672_p13 }
  0x42   :  { %1682 = shalt.err (!%p1679_p3)
}
  0x43   :  { %64 = dma.hbm_to_vmem [thread:$0]  %s2011_s4, 512, %s1797_s26, [#allocation10], %s1715_s9, %s1715_s9, %s1716_s10  }
  0x44   :  { %1705 = dma.done.wait [#allocation4], 1024  }
  0x45   :  { %1706 = vsyncadd [#allocation4], 4294966272 }
  0x46   :  { %1707 = dma.done.wait [#allocation7], 768  }
  0x47   :  { %1708 = vsyncadd [#allocation7], 4294966528 }
  0x48   :  { %1709 = dma.done.wait [#allocation10], 512  }
  0x49   :  { %1710 = vsyncadd [#allocation10], 4294966784  ;;  %vm96_vm0 = vcmask 130048   ;;  %v87_v0 = vld [vmem:[#allocation6] sm:$0xff]  ;;  %v88_v1 = vld [vmem:[#allocation6 + $0x8] sm:$0xff]  ;;  %v1719_v10 = vmov 0.0|0.0  }
  0x4a   :  { %v83_v2 = vld [vmem:[#allocation3 + $0x20] sm:$0xff]  ;;  %v1457_v3 = vpack.c.bf16 %v88_v1, %v87_v0  ;;  %v226_v4 = vld [vmem:[#allocation8] sm:$0xff]  ;;  %v227_v5 = vld [vmem:[#allocation8 + $0x8] sm:$0xff]  ;;  %vm1720_vm1 = vmmov 0   ;;  %v1721_v16 = vmov 0.0   ;;  %s1722_s22 = smov 64  }
  0x4b   :  { %1343 = vmatprep.mubr.msk.f32.mxu1 %vm96_vm0, %v83_v2  ;;  %v79_v6 = vld [vmem:[#allocation3] sm:$0xff]  ;;  %v84_v7 = vld [vmem:[#allocation3 + $0x28] sm:$0xff]  ;;  %v1835_v8 = vpack.c.bf16 %v227_v5, %v226_v4  ;;  %v85_v11 = vld [vmem:[#allocation3 + $0x30] sm:$0xff]  ;;  %vm230_vm2 = vcmask 261120  }
  0x4c   :  { %1517 = vmatprep.subr.bf16.mxu1 %v1457_v3  ;;  %1458 = vmatprep.subr.bf16.mxu0 %v1457_v3  ;;  %v80_v9 = vld [vmem:[#allocation3 + $0x8] sm:$0xff]  ;;  %v228_v12 = vld [vmem:[#allocation8 + $0x10] sm:$0xff]  ;;  %v86_v14 = vld [vmem:[#allocation3 + $0x38] sm:$0xff] }
  0x4d   :  { %1518 = vmatpush3.bf16.msra.mxu1 %v1457_v3  ;;  %1460 = vmatpush3.bf16.msra.mxu0 %v1457_v3  ;;  %v229_v13 = vld [vmem:[#allocation8 + $0x18] sm:$0xff]  ;;  %v1870_v21 = vld [vmem:[%s2010_s3] ss:$0 sm:$0xff]  ;;  %s1723_s3 = smov 32   ;;  %v81_v56 = vld [vmem:[#allocation3 + $0x10] sm:$0xff] }
  0x4e   :  { %1461 = vmatprep.subr.bf16.mxu1 %v1719_v10  ;;  %1337 = vmatprep.mubr.msk.f32.mxu0 %vm96_vm0, %v79_v6  ;;  %v1844_v15 = vpack.c.bf16 %v229_v13, %v228_v12  ;;  %v82_v57 = vld [vmem:[#allocation3 + $0x18] sm:$0xff] }
  0x4f   :  { %1473 = vmatprep.subr.bf16.mxu0 %v1719_v10 }
  0x50   :  { %1344 = vmatmul.mubr.msk.f32.vlgmr.msra.gmra.mrb[0].mxu1 %vm96_vm0, %v84_v7  ;;  %1338 = vmatmul.mubr.msk.f32.vlgmr.msra.gmra.mrb[0].mxu0 %vm96_vm0, %v80_v9 }
  0x51   :  { %1463 = vmatpush3.bf16.msra.mxu1 %v1835_v8  ;;  %1346 = vmatprep.mubr.msk.f32.mxu1 %vm96_vm0, %v85_v11 }
  0x52   :  { %1464 = vmatprep.subr.bf16.mxu1 %v1719_v10  ;;  %1475 = vmatpush3.bf16.msra.mxu0 %v1835_v8 }
  0x53   :  { %1476 = vmatprep.subr.bf16.mxu0 %v1719_v10  ;;  %1340 = vmatprep.mubr.msk.f32.mxu0 %vm96_vm0, %v81_v56 }
  0x54   :  { %1347 = vmatmul.mubr.msk.f32.gmra.mrb[2].mxu1 %vm96_vm0, %v86_v14  ;;  %1341 = vmatmul.mubr.msk.f32.gmra.mrb[2].mxu0 %vm96_vm0, %v82_v57 }
  0x55   :  { %1466 = vmatpush3.bf16.msra.mxu1 %v1844_v15  ;;  %1357 = vmatprep.mubr.msk.f32.mxu1 %vm1720_vm1, %v1721_v16 }
  0x56   :  { %1467 = vmatprep.subr.bf16.mxu1 %v1719_v10  ;;  %1478 = vmatpush3.bf16.msra.mxu0 %v1844_v15 }
  0x57   :  { %1485 = vmatprep.subr.bf16.mxu0 %v1719_v10  ;;  %1379 = vmatprep.mubr.msk.f32.mxu0 %vm1720_vm1, %v1721_v16 }
  0x58   :  { %1358 = vmatmul.mubr.f32.vlgmr.msra.gmra.mrb[4].mxu1 %v1721_v16 }
  0x59   :  { %1469 = vmatpush3.bf16.msra.mxu1 %v1835_v8  ;;  %1368 = vmatprep.mubr.msk.f32.mxu1 %vm1720_vm1, %v1721_v16 }
  0x5a   :  { %1470 = vmatprep.subr.bf16.mxu1 %v1719_v10 }
  0x5d   :  { %1472 = vmatpush3.bf16.msra.mxu1 %v1844_v15 }
  0x5e   :  { %1479 = vmatprep.subr.bf16.mxu1 %v1719_v10 }
 0x123   :  { %v1863_v17 = vpop.f32.mrb[0].mxu1  ;;  %v1339_v18 = vpop.f32.mrb[0].mxu0 }
 0x124   :  { %v1865_v19 = vpop.f32.mrb[1].mxu1  ;;  %v187_v20 = vpop.f32.mrb[1].mxu0  ;;  %v193_v42 = vadd.f32 %v1339_v18, %v1870_v21 }
 0x125   :  { %v188_v24 = vadd.f32 %v1870_v21, %v187_v20 }
 0x127   :  { %v1872_v22 = vpop.f32.mrb[2].mxu1  ;;  %v1342_v61 = vpop.f32.mrb[2].mxu0 }
 0x128   :  { %v1874_v23 = vpop.f32.mrb[3].mxu1  ;;  %v197_v62 = vpop.f32.mrb[3].mxu0 }
 0x129   :  { %v198_v0 = vadd.f32 %v1870_v21, %v197_v62  ;;  %v213_v62 = vadd.f32 %v1863_v17, %v1870_v21 }
 0x12b   :  { %v300_v25 = vpop.f32.mrb[4].mxu1 }
 0x12c   :  { %v304_v26 = vadd.f32 %v300_v25, %v188_v24  ;;  %v1359_v27 = vpop.f32.mrb[5].mxu1 }
 0x12d   :  { %v203_v27 = vadd.f32 %v1342_v61, %v1870_v21 }
 0x12e   :  { %1531 = vtanh.f32 %v304_v26  ;;  %v1247_v29 = vmul.f32 -1.442695, %v304_v26 }
 0x130   :  { %1533 = vpow2.f32 %v1247_v29 }
 0x138   :  { %v1532_v28 = vpop.eup %1531 }
 0x139   :  { %314 = vrot.lane.b32.xlu0 %v1532_v28, %s1722_s22 }
 0x13a   :  { %v1534_v30 = vpop.eup %1533 }
 0x13b   :  { %v308_v31 = vadd.f32 1.0, %v1534_v30 }
 0x13d   :  { %1535 = vrcp.f32 %v308_v31 }
 0x147   :  { %v1536_v32 = vpop.eup %1535 }
 0x148   :  { %v312_v35 = vmul.f32 0.0, %v1536_v32 }
 0x1ab   :  { %v315_v33 = vpop.permute.xlu0 %314 }
 0x1ac   :  { %v317_v34 = vmul.f32 %v1536_v32, %v315_v33 }
 0x1ae   :  { %319 = vrot.lane.b32.xlu0 %v317_v34, %s1723_s3 }
 0x220   :  { %v320_v36 = vpop.permute.xlu0 %319 }
 0x221   :  { %v322_v37 = vadd.f32 %v320_v36, %v312_v35 }
 0x223   :  { %1537 = vtanh.f32 %v322_v37 }
 0x22d   :  { %v1538_v38 = vpop.eup %1537 }
 0x22e   :  { %325 = vrot.lane.b32.xlu1 %v1538_v38, %s1722_s22 }
 0x2a0   :  { %v326_v39 = vpop.permute.xlu1 %325 }
 0x2a1   :  { %v328_v40 = vmul.f32 %v1536_v32, %v326_v39 }
 0x2a3   :  { %330 = vrot.lane.b32.xlu1 %v328_v40, %s1723_s3 }
 0x315   :  { %v331_v41 = vpop.permute.xlu1 %330 }
 0x316   :  { %333 = vst.msk [vmem:[#allocation2] sm:$0xff] %vm230_vm2, %v331_v41  ;;  %1369 = vmatmul.mubr.msk.f32.vlgmr.msra.gmra.mrb[6].mxu1 %vm230_vm2, %v331_v41 }
 0x317   :  { %1481 = vmatpush3.bf16.msra.mxu1 %v1835_v8  ;;  %1390 = vmatprep.mubr.msk.f32.mxu1 %vm1720_vm1, %v1721_v16 }
 0x318   :  { %1482 = vmatprep.subr.bf16.mxu1 %v1719_v10 }
 0x31b   :  { %1484 = vmatpush3.bf16.msra.mxu1 %v1844_v15 }
 0x31c   :  { %1491 = vmatprep.subr.bf16.mxu1 %v1719_v10 }
 0x3e9   :  { %v402_v43 = vpop.f32.mrb[6].mxu1 }
 0x3ea   :  { %v406_v44 = vadd.f32 %v402_v43, %v193_v42  ;;  %v1370_v45 = vpop.f32.mrb[7].mxu1 }
 0x3eb   :  { %v208_v45 = vadd.f32 %v1870_v21, %v1865_v19 }
 0x3ec   :  { %1539 = vtanh.f32 %v406_v44  ;;  %v1249_v47 = vmul.f32 -1.442695, %v406_v44 }
 0x3ee   :  { %1541 = vpow2.f32 %v1249_v47 }
 0x3f6   :  { %v1540_v46 = vpop.eup %1539 }
 0x3f7   :  { %416 = vrot.lane.b32.xlu0 %v1540_v46, %s1722_s22 }
 0x3f8   :  { %v1542_v48 = vpop.eup %1541 }
 0x3f9   :  { %v410_v49 = vadd.f32 1.0, %v1542_v48 }
 0x3fb   :  { %1543 = vrcp.f32 %v410_v49 }
 0x405   :  { %v1544_v50 = vpop.eup %1543 }
 0x406   :  { %v414_v53 = vmul.f32 %v1544_v50, %v322_v37 }
 0x469   :  { %v417_v51 = vpop.permute.xlu0 %416 }
 0x46a   :  { %v419_v52 = vmul.f32 %v1544_v50, %v417_v51 }
 0x46c   :  { %421 = vrot.lane.b32.xlu1 %v419_v52, %s1723_s3 }
 0x4de   :  { %v422_v54 = vpop.permute.xlu1 %421 }
 0x4df   :  { %v424_v55 = vadd.f32 %v422_v54, %v414_v53 }
 0x4e1   :  { %1545 = vtanh.f32 %v424_v55 }
 0x4eb   :  { %v1546_v58 = vpop.eup %1545 }
 0x4ec   :  { %427 = vrot.lane.b32.xlu0 %v1546_v58, %s1722_s22 }
 0x55e   :  { %v428_v59 = vpop.permute.xlu0 %427 }
 0x55f   :  { %v430_v60 = vmul.f32 %v1544_v50, %v428_v59 }
 0x561   :  { %432 = vrot.lane.b32.xlu1 %v430_v60, %s1723_s3 }
 0x5d3   :  { %v433_v63 = vpop.permute.xlu1 %432 }
 0x5d4   :  { %436 = vst.msk [vmem:[#allocation2 + $0x8] sm:$0xff] %vm230_vm2, %v433_v63  ;;  %1380 = vmatmul.mubr.msk.f32.vlgmr.msra.gmra.mrb[4].mxu0 %vm230_vm2, %v433_v63 }
 0x5d5   :  { %1487 = vmatpush3.bf16.msra.mxu0 %v1835_v8  ;;  %1401 = vmatprep.mubr.msk.f32.mxu0 %vm1720_vm1, %v1721_v16 }
 0x5d6   :  { %1488 = vmatprep.subr.bf16.mxu0 %v1719_v10 }
 0x5d9   :  { %1490 = vmatpush3.bf16.msra.mxu0 %v1844_v15 }
 0x5da   :  { %1497 = vmatprep.subr.bf16.mxu0 %v1719_v10 }
 0x6a7   :  { %v505_v1 = vpop.f32.mrb[4].mxu0 }
 0x6a8   :  { %v509_v2 = vadd.f32 %v505_v1, %v198_v0  ;;  %v1381_v3 = vpop.f32.mrb[5].mxu0 }
 0x6aa   :  { %1547 = vtanh.f32 %v509_v2  ;;  %v1251_v5 = vmul.f32 -1.442695, %v509_v2 }
 0x6ac   :  { %1549 = vpow2.f32 %v1251_v5 }
 0x6b4   :  { %v1548_v4 = vpop.eup %1547 }
 0x6b5   :  { %519 = vrot.lane.b32.xlu0 %v1548_v4, %s1722_s22 }
 0x6b6   :  { %v1550_v6 = vpop.eup %1549 }
 0x6b7   :  { %v513_v7 = vadd.f32 1.0, %v1550_v6 }
 0x6b9   :  { %1551 = vrcp.f32 %v513_v7  ;;  %v1063_v7 = vld [vmem:[#allocation9] sm:$0xff] }
 0x6c3   :  { %v1552_v9 = vpop.eup %1551 }
 0x6c4   :  { %v517_v13 = vmul.f32 %v1552_v9, %v424_v55 }
 0x727   :  { %v520_v11 = vpop.permute.xlu0 %519 }
 0x728   :  { %v522_v12 = vmul.f32 %v1552_v9, %v520_v11 }
 0x72a   :  { %524 = vrot.lane.b32.xlu1 %v522_v12, %s1723_s3 }
 0x79c   :  { %v525_v14 = vpop.permute.xlu1 %524 }
 0x79d   :  { %v527_v18 = vadd.f32 %v525_v14, %v517_v13 }
 0x79f   :  { %1553 = vtanh.f32 %v527_v18 }
 0x7a9   :  { %v1554_v20 = vpop.eup %1553 }
 0x7aa   :  { %530 = vrot.lane.b32.xlu0 %v1554_v20, %s1722_s22  ;;  %v1066_v20 = vld [vmem:[#allocation9 + $0x18] sm:$0xff] }
 0x81c   :  { %v531_v24 = vpop.permute.xlu0 %530 }
 0x81d   :  { %v533_v25 = vmul.f32 %v1552_v9, %v531_v24  ;;  %v1064_v9 = vld [vmem:[#allocation9 + $0x8] sm:$0xff] }
 0x81e   :  { %v1509_v11 = vpack.c.bf16 %v1064_v9, %v1063_v7 }
 0x81f   :  { %535 = vrot.lane.b32.xlu1 %v533_v25, %s1723_s3 }
 0x891   :  { %v536_v26 = vpop.permute.xlu1 %535 }
 0x892   :  { %539 = vst.msk [vmem:[#allocation2 + $0x10] sm:$0xff] %vm230_vm2, %v536_v26  ;;  %1391 = vmatmul.mubr.msk.f32.vlgmr.msra.gmra.mrb[8].mxu1 %vm230_vm2, %v536_v26  ;;  %v1055_v26 = vld [vmem:[#allocation2] sm:$0xff] }
 0x893   :  { %1493 = vmatpush3.bf16.msra.mxu1 %v1835_v8  ;;  %1412 = vmatprep.mubr.msk.f32.mxu1 %vm1720_vm1, %v1721_v16 }
 0x894   :  { %1494 = vmatprep.subr.bf16.mxu1 %v1719_v10 }
 0x897   :  { %1496 = vmatpush3.bf16.msra.mxu1 %v1844_v15 }
 0x898   :  { %1503 = vmatprep.subr.bf16.mxu1 %v1719_v10 }
 0x965   :  { %v608_v28 = vpop.f32.mrb[8].mxu1 }
 0x966   :  { %v612_v29 = vadd.f32 %v608_v28, %v203_v27  ;;  %v1392_v30 = vpop.f32.mrb[9].mxu1  ;;  %v1056_v27 = vld [vmem:[#allocation2 + $0x8] sm:$0xff]  ;;  %v1057_v28 = vld [vmem:[#allocation2 + $0x10] sm:$0xff] }
 0x968   :  { %1555 = vtanh.f32 %v612_v29  ;;  %v1253_v32 = vmul.f32 -1.442695, %v612_v29 }
 0x96a   :  { %1557 = vpow2.f32 %v1253_v32  ;;  %v218_v32 = vadd.f32 %v1870_v21, %v1874_v23 }
 0x972   :  { %v1556_v31 = vpop.eup %1555 }
 0x973   :  { %622 = vrot.lane.b32.xlu0 %v1556_v31, %s1722_s22 }
 0x974   :  { %v1558_v33 = vpop.eup %1557 }
 0x975   :  { %v616_v34 = vadd.f32 1.0, %v1558_v33 }
 0x977   :  { %1559 = vrcp.f32 %v616_v34 }
 0x981   :  { %v1560_v35 = vpop.eup %1559 }
 0x982   :  { %v620_v38 = vmul.f32 %v1560_v35, %v527_v18  ;;  %v1065_v18 = vld [vmem:[#allocation9 + $0x10] sm:$0xff] }
 0x983   :  { %v1513_v24 = vpack.c.bf16 %v1066_v20, %v1065_v18 }
 0x9e5   :  { %v623_v36 = vpop.permute.xlu0 %622 }
 0x9e6   :  { %v625_v37 = vmul.f32 %v1560_v35, %v623_v36  ;;  %v1966_v36 = vld [vmem:[%s2012_s5] ss:$0 sm:$0xff]  ;;  %s1724_s5 = smov [#allocation11]  }
 0x9e7   :  { %s1224_s26 = sshll.u32 %s1724_s5, 4  ;;  %s1225_s26 = int_to_ptr.vmem [resolvable:$true] %s1224_s26 }
 0x9e8   :  { %627 = vrot.lane.b32.xlu1 %v625_v37, %s1723_s3  ;;  %s1683_s27 = scalar_lea.vmem %s1225_s26, 1024  ;;  %p1688_p5 = scmp.lt.s32.totalorder %s1225_s26, %s1225_s26 }
 0x9e9   :  { %p1684_p4 = scmp.ne.s32.totalorder %s1225_s26, %s1683_s27  ;;  %p1689_p6 = scmp.lt.s32.totalorder %s1683_s27, %s1683_s27 }
 0x9eb   :  { %p1690_p7 = por %p1689_p6, %p1688_p5 }
 0x9ed   :  { %p1691_p8 = pnand %p1690_p7, %p1684_p4 }
 0xa5a   :  { %v628_v39 = vpop.permute.xlu1 %627 }
 0xa5b   :  { %v630_v40 = vadd.f32 %v628_v39, %v620_v38 }
 0xa5d   :  { %1561 = vtanh.f32 %v630_v40 }
 0xa67   :  { %v1562_v41 = vpop.eup %1561 }
 0xa68   :  { %633 = vrot.lane.b32.xlu0 %v1562_v41, %s1722_s22 }
 0xada   :  { %v634_v42 = vpop.permute.xlu0 %633 }
 0xadb   :  { %v636_v43 = vmul.f32 %v1560_v35, %v634_v42 }
 0xadd   :  { %638 = vrot.lane.b32.xlu1 %v636_v43, %s1723_s3 }
 0xb4f   :  { %v639_v44 = vpop.permute.xlu1 %638 }
 0xb50   :  { %642 = vst.msk [vmem:[#allocation2 + $0x18] sm:$0xff] %vm230_vm2, %v639_v44  ;;  %1402 = vmatmul.mubr.msk.f32.vlgmr.msra.gmra.mrb[6].mxu0 %vm230_vm2, %v639_v44 }
 0xb51   :  { %1499 = vmatpush3.bf16.msra.mxu0 %v1835_v8  ;;  %1423 = vmatprep.mubr.msk.f32.mxu0 %vm1720_vm1, %v1721_v16 }
 0xb52   :  { %1500 = vmatprep.subr.bf16.mxu0 %v1719_v10 }
 0xb55   :  { %1502 = vmatpush3.bf16.msra.mxu0 %v1844_v15 }
 0xb56   :  { %1510 = vmatprep.subr.bf16.mxu0 %v1509_v11 }
 0xb57   :  { %v1058_v29 = vld [vmem:[#allocation2 + $0x18] sm:$0xff] }
 0xc23   :  { %v711_v46 = vpop.f32.mrb[6].mxu0 }
 0xc24   :  { %v715_v47 = vadd.f32 %v711_v46, %v208_v45  ;;  %v1403_v48 = vpop.f32.mrb[7].mxu0 }
 0xc26   :  { %1563 = vtanh.f32 %v715_v47  ;;  %v1255_v50 = vmul.f32 -1.442695, %v715_v47 }
 0xc28   :  { %1565 = vpow2.f32 %v1255_v50 }
 0xc30   :  { %v1564_v49 = vpop.eup %1563 }
 0xc31   :  { %725 = vrot.lane.b32.xlu0 %v1564_v49, %s1722_s22 }
 0xc32   :  { %v1566_v51 = vpop.eup %1565 }
 0xc33   :  { %v719_v52 = vadd.f32 1.0, %v1566_v51 }
 0xc35   :  { %1567 = vrcp.f32 %v719_v52 }
 0xc3f   :  { %v1568_v53 = vpop.eup %1567 }
 0xc40   :  { %v723_v56 = vmul.f32 %v1568_v53, %v630_v40 }
 0xca3   :  { %v726_v54 = vpop.permute.xlu0 %725 }
 0xca4   :  { %v728_v55 = vmul.f32 %v1568_v53, %v726_v54 }
 0xca6   :  { %730 = vrot.lane.b32.xlu1 %v728_v55, %s1723_s3 }
 0xd18   :  { %v731_v57 = vpop.permute.xlu1 %730 }
 0xd19   :  { %v733_v19 = vadd.f32 %v731_v57, %v723_v56 }
 0xd1b   :  { %1569 = vtanh.f32 %v733_v19 }
 0xd25   :  { %v1570_v58 = vpop.eup %1569 }
 0xd26   :  { %736 = vrot.lane.b32.xlu0 %v1570_v58, %s1722_s22 }
 0xd98   :  { %v737_v59 = vpop.permute.xlu0 %736 }
 0xd99   :  { %v739_v60 = vmul.f32 %v1568_v53, %v737_v59 }
 0xd9b   :  { %741 = vrot.lane.b32.xlu1 %v739_v60, %s1723_s3 }
 0xe0d   :  { %v742_v61 = vpop.permute.xlu1 %741 }
 0xe0e   :  { %745 = vst.msk [vmem:[#allocation2 + $0x20] sm:$0xff] %vm230_vm2, %v742_v61  ;;  %1413 = vmatmul.mubr.msk.f32.vlgmr.msra.gmra.mrb[10].mxu1 %vm230_vm2, %v742_v61 }
 0xe0f   :  { %1505 = vmatpush3.bf16.msra.mxu1 %v1835_v8  ;;  %1434 = vmatprep.mubr.msk.f32.mxu1 %vm1720_vm1, %v1721_v16 }
 0xe10   :  { %1506 = vmatprep.subr.bf16.mxu1 %v1719_v10 }
 0xe13   :  { %1508 = vmatpush3.bf16.msra.mxu1 %v1844_v15 }
 0xe15   :  { %v1059_v30 = vld [vmem:[#allocation2 + $0x20] sm:$0xff] }
 0xee1   :  { %v814_v63 = vpop.f32.mrb[10].mxu1 }
 0xee2   :  { %v818_v0 = vadd.f32 %v814_v63, %v213_v62  ;;  %v1414_v1 = vpop.f32.mrb[11].mxu1 }
 0xee4   :  { %1571 = vtanh.f32 %v818_v0  ;;  %v1257_v3 = vmul.f32 -1.442695, %v818_v0 }
 0xee6   :  { %1573 = vpow2.f32 %v1257_v3 }
 0xeee   :  { %v1572_v2 = vpop.eup %1571 }
 0xeef   :  { %828 = vrot.lane.b32.xlu0 %v1572_v2, %s1722_s22 }
 0xef0   :  { %v1574_v8 = vpop.eup %1573 }
 0xef1   :  { %v822_v4 = vadd.f32 1.0, %v1574_v8  ;;  %v223_v8 = vadd.f32 %v1872_v22, %v1870_v21 }
 0xef3   :  { %1575 = vrcp.f32 %v822_v4 }
 0xefd   :  { %v1576_v16 = vpop.eup %1575 }
 0xefe   :  { %v826_v15 = vmul.f32 %v1576_v16, %v733_v19 }
 0xf61   :  { %v829_v5 = vpop.permute.xlu0 %828 }
 0xf62   :  { %v831_v10 = vmul.f32 %v1576_v16, %v829_v5 }
 0xf64   :  { %833 = vrot.lane.b32.xlu1 %v831_v10, %s1723_s3 }
 0xfd6   :  { %v834_v6 = vpop.permute.xlu1 %833 }
 0xfd7   :  { %v1948_v17 = vadd.f32 %v834_v6, %v826_v15 }
 0xfd9   :  { %1577 = vtanh.f32 %v1948_v17 }
 0xfe3   :  { %v1578_v12 = vpop.eup %1577 }
 0xfe4   :  { %839 = vrot.lane.b32.xlu0 %v1578_v12, %s1722_s22 }
0x1056   :  { %v840_v13 = vpop.permute.xlu0 %839 }
0x1057   :  { %v842_v14 = vmul.f32 %v1576_v16, %v840_v13 }
0x1059   :  { %844 = vrot.lane.b32.xlu1 %v842_v14, %s1723_s3 }
0x10cb   :  { %v845_v25 = vpop.permute.xlu1 %844 }
0x10cc   :  { %848 = vst.msk [vmem:[#allocation2 + $0x28] sm:$0xff] %vm230_vm2, %v845_v25  ;;  %1424 = vmatmul.mubr.msk.f32.vlgmr.msra.gmra.mrb[8].mxu0 %vm230_vm2, %v845_v25 }
0x10cd   :  { %1512 = vmatpush3.bf16.msra.mxu0 %v1509_v11  ;;  %1445 = vmatprep.mubr.msk.f32.mxu0 %vm230_vm2, %v1055_v26 }
0x10ce   :  { %1514 = vmatprep.subr.bf16.mxu0 %v1513_v24 }
0x10d1   :  { %1516 = vmatpush3.bf16.msra.mxu0 %v1513_v24 }
0x10d3   :  { %v1060_v31 = vld [vmem:[#allocation2 + $0x28] sm:$0xff] }
0x10d4   :  { %1446 = vmatmul.mubr.msk.f32.vlgmr.msra.gmra.mrb[10].mxu0 %vm230_vm2, %v1056_v27 }
0x10d5   :  { %1448 = vmatprep.mubr.msk.f32.mxu0 %vm230_vm2, %v1057_v28 }
0x10d8   :  { %1449 = vmatmul.mubr.msk.f32.gmra.mrb[12].mxu0 %vm230_vm2, %v1058_v29 }
0x10d9   :  { %1451 = vmatprep.mubr.msk.f32.mxu0 %vm230_vm2, %v1059_v30 }
0x10dc   :  { %1452 = vmatmul.mubr.msk.f32.gmra.mrb[14].mxu0 %vm230_vm2, %v1060_v31 }
0x119f   :  { %v917_v33 = vpop.f32.mrb[8].mxu0 }
0x11a0   :  { %v921_v34 = vadd.f32 %v917_v33, %v218_v32  ;;  %v1425_v35 = vpop.f32.mrb[9].mxu0 }
0x11a2   :  { %1579 = vtanh.f32 %v921_v34  ;;  %v1259_v55 = vmul.f32 -1.442695, %v921_v34 }
0x11a4   :  { %1581 = vpow2.f32 %v1259_v55 }
0x11a7   :  { %v1447_v37 = vpop.f32.mrb[10].mxu0 }
0x11a8   :  { %v1170_v38 = vadd.f32 %v1447_v37, %v1966_v36  ;;  %v1164_v39 = vpop.f32.mrb[11].mxu0 }
0x11a9   :  { %v1165_v40 = vadd.f32 %v1966_v36, %v1164_v39 }
0x11aa   :  { %v1204_v41 = vmax.f32 %v1170_v38, 0.0 }
0x11ab   :  { %v1203_v42 = vmax.f32 %v1165_v40, 0.0  ;;  %v1450_v43 = vpop.f32.mrb[12].mxu0 }
0x11ac   :  { %v1580_v44 = vpop.eup %1579  ;;  %1212 = vst [vmem:[#allocation11 + $0x8] sm:$0xff] %v1204_v41  ;;  %v1180_v23 = vadd.f32 %v1450_v43, %v1966_v36  ;;  %v1174_v45 = vpop.f32.mrb[13].mxu0 }
0x11ad   :  { %1211 = vst [vmem:[#allocation11] sm:$0xff] %v1203_v42  ;;  %v1175_v46 = vadd.f32 %v1966_v36, %v1174_v45  ;;  %931 = vrot.lane.b32.xlu0 %v1580_v44, %s1722_s22 }
0x11ae   :  { %v1206_v47 = vmax.f32 %v1180_v23, 0.0  ;;  %v1582_v56 = vpop.eup %1581 }
0x11af   :  { %v1205_v48 = vmax.f32 %v1175_v46, 0.0  ;;  %v1453_v49 = vpop.f32.mrb[14].mxu0  ;;  %v925_v57 = vadd.f32 1.0, %v1582_v56 }
0x11b0   :  { %1214 = vst [vmem:[#allocation11 + $0x18] sm:$0xff] %v1206_v47  ;;  %v1190_v50 = vadd.f32 %v1453_v49, %v1966_v36  ;;  %v1184_v51 = vpop.f32.mrb[15].mxu0 }
0x11b1   :  { %1213 = vst [vmem:[#allocation11 + $0x10] sm:$0xff] %v1205_v48  ;;  %v1185_v52 = vadd.f32 %v1966_v36, %v1184_v51  ;;  %1583 = vrcp.f32 %v925_v57 }
0x11b2   :  { %v1208_v53 = vmax.f32 %v1190_v50, 0.0 }
0x11b3   :  { %v1207_v54 = vmax.f32 %v1185_v52, 0.0 }
0x11b4   :  { %1216 = vst [vmem:[#allocation11 + $0x28] sm:$0xff] %v1208_v53 }
0x11b5   :  { %1215 = vst [vmem:[#allocation11 + $0x20] sm:$0xff] %v1207_v54 }
0x11bb   :  { %v1584_v19 = vpop.eup %1583 }
0x11bc   :  { %v929_v60 = vmul.f32 %v1584_v19, %v1948_v17 }
0x121f   :  { %v932_v58 = vpop.permute.xlu0 %931 }
0x1220   :  { %v934_v59 = vmul.f32 %v1584_v19, %v932_v58 }
0x1222   :  { %936 = vrot.lane.b32.xlu1 %v934_v59, %s1723_s3 }
0x1294   :  { %v937_v61 = vpop.permute.xlu1 %936 }
0x1295   :  { %v939_v62 = vadd.f32 %v937_v61, %v929_v60 }
0x1297   :  { %1585 = vtanh.f32 %v939_v62 }
0x12a1   :  { %v1586_v63 = vpop.eup %1585 }
0x12a2   :  { %942 = vrot.lane.b32.xlu0 %v1586_v63, %s1722_s22 }
0x1314   :  { %v943_v0 = vpop.permute.xlu0 %942 }
0x1315   :  { %v945_v1 = vmul.f32 %v1584_v19, %v943_v0 }
0x1317   :  { %947 = vrot.lane.b32.xlu1 %v945_v1, %s1723_s3 }
0x1389   :  { %v948_v2 = vpop.permute.xlu1 %947 }
0x138a   :  { %951 = vst.msk [vmem:[#allocation2 + $0x30] sm:$0xff] %vm230_vm2, %v948_v2  ;;  %1435 = vmatmul.mubr.msk.f32.vlgmr.msra.gmra.mrb[12].mxu1 %vm230_vm2, %v948_v2 }
0x1391   :  { %v1061_v3 = vld [vmem:[#allocation2 + $0x30] sm:$0xff] }
0x1392   :  { %1454 = vmatprep.mubr.msk.f32.mxu0 %vm230_vm2, %v1061_v3 }
0x145d   :  { %v1020_v4 = vpop.f32.mrb[12].mxu1 }
0x145e   :  { %v1024_v16 = vadd.f32 %v1020_v4, %v223_v8  ;;  %v1436_v5 = vpop.f32.mrb[13].mxu1 }
0x1460   :  { %1587 = vtanh.f32 %v1024_v16  ;;  %v1261_v15 = vmul.f32 -1.442695, %v1024_v16 }
0x1462   :  { %1589 = vpow2.f32 %v1261_v15 }
0x146a   :  { %v1588_v10 = vpop.eup %1587 }
0x146b   :  { %1034 = vrot.lane.b32.xlu0 %v1588_v10, %s1722_s22 }
0x146c   :  { %v1590_v6 = vpop.eup %1589 }
0x146d   :  { %v1028_v17 = vadd.f32 1.0, %v1590_v6 }
0x146f   :  { %1591 = vrcp.f32 %v1028_v17 }
0x1479   :  { %v1592_v7 = vpop.eup %1591 }
0x147a   :  { %v1032_v12 = vmul.f32 %v1592_v7, %v939_v62 }
0x14dd   :  { %v1035_v9 = vpop.permute.xlu0 %1034 }
0x14de   :  { %v1037_v11 = vmul.f32 %v1592_v7, %v1035_v9 }
0x14e0   :  { %1039 = vrot.lane.b32.xlu1 %v1037_v11, %s1723_s3 }
0x1552   :  { %v1040_v13 = vpop.permute.xlu1 %1039 }
0x1553   :  { %v1042_v21 = vadd.f32 %v1040_v13, %v1032_v12 }
0x1555   :  { %1593 = vtanh.f32 %v1042_v21 }
0x155f   :  { %v1594_v22 = vpop.eup %1593 }
0x1560   :  { %1045 = vrot.lane.b32.xlu0 %v1594_v22, %s1722_s22 }
0x15d2   :  { %v1046_v14 = vpop.permute.xlu0 %1045 }
0x15d3   :  { %v1048_v18 = vmul.f32 %v1592_v7, %v1046_v14 }
0x15d5   :  { %1050 = vrot.lane.b32.xlu1 %v1048_v18, %s1723_s3 }
0x1647   :  { %v1051_v20 = vpop.permute.xlu1 %1050 }
0x1648   :  { %1054 = vst.msk [vmem:[#allocation2 + $0x38] sm:$0xff] %vm230_vm2, %v1051_v20 }
0x164f   :  { %v1062_v24 = vld [vmem:[#allocation2 + $0x38] sm:$0xff] }
0x1650   :  { %1455 = vmatmul.mubr.msk.f32.gmra.mrb[16].mxu0 %vm230_vm2, %v1062_v24 }
0x1723   :  { %v1456_v25 = vpop.f32.mrb[16].mxu0 }
0x1724   :  { %v1200_v26 = vadd.f32 %v1456_v25, %v1966_v36  ;;  %v1194_v27 = vpop.f32.mrb[17].mxu0 }
0x1725   :  { %v1195_v28 = vadd.f32 %v1966_v36, %v1194_v27 }
0x1726   :  { %v1210_v29 = vmax.f32 %v1200_v26, 0.0 }
0x1727   :  { %v1209_v30 = vmax.f32 %v1195_v28, 0.0 }
0x1728   :  { %1218 = vst [vmem:[#allocation11 + $0x38] sm:$0xff] %v1210_v29 }
0x1729   :  { %1217 = vst [vmem:[#allocation11 + $0x30] sm:$0xff] %v1209_v30 }
0x172a   :  { %1694 = shalt.err (!%p1691_p8)
}
0x172b   :  { %s1695_s30 = scalar_lea.hbm %s2013_s6, 1024 }
0x172c   :  { %p1696_p9 = scmp.ne.s32.totalorder %s2013_s6, %s1695_s30  ;;  %p1699_p10 = scmp.lt.u32.totalorder %s1695_s30, %s2013_s6 }
0x172e   :  { %p1701_p11 = pnand %p1699_p10, %p1696_p9 }
0x1730   :  { %1704 = shalt.err (!%p1701_p11)
}
0x1731   :  { %1230 = dma.vmem_to_hbm [thread:$0]  %s1225_s26, 1024, %s2013_s6, [#allocation5], %s1715_s9, %s1715_s9, %s1716_s10  }
0x1732   :  { %1711 = dma.done.wait [#allocation5], 1024  }
0x1733   :  { %1712 = vsyncadd [#allocation5], 4294966272 }
0x1734   :  { %1234 = vsyncpa [#allocation4], 1 }
0x1735   :  { %1235 = vsyncpa [#allocation7], 1 }
0x1736   :  { %1236 = vsyncpa [#allocation10], 1 }
0x1737   :  { %1237 = vsyncpa [#allocation5], 1 }

</bundles_post_ra>
